<compile_context>
chip_gen: v6e
topology: v6e:2x2x1
jax: 0.10.0
libtpu: 0.0.40
codegen_flags: <defaults>
</compile_context>

<pallas_src>
import jax
import jax.numpy as jnp
from jax import lax
from jax.experimental import pallas as pl
from jax.experimental.pallas import tpu as pltpu

KH = KW = 3  # kernel_size = 3


def conv2d_3x3_pallas(x_nchw, weight_oihw, bias, *, tile_h=8,
                      compute_dtype=jnp.bfloat16):
    """Equivalent of nn.Conv2d(Cin, Cout, kernel_size=3, stride=1, padding=1, bias=True).

    x_nchw:      (N, Cin, H, W)   float32, NCHW (PyTorch layout)
    weight_oihw: (Cout, Cin, 3, 3)
    bias:        (Cout,)
    returns:     (N, Cout, H, W)
    """
    N, Cin, H, W = x_nchw.shape
    Cout = weight_oihw.shape[0]

    # Row-tile size: keep output tiles lane-dense (TH*W a multiple of 128) when possible,
    # otherwise fall back to one tile over all rows (block == full dim is always legal).
    if H % tile_h == 0 and (tile_h * W) % 128 == 0:
        TH = tile_h
    else:
        TH = H
    T = H // TH
    M = TH * W                      # output tile lane width (128 for the test shapes)
    K1 = KW * Cin                   # kw-major channel-tap dim
    K1p = ((K1 + 15) // 16) * 16    # pad to bf16 sublane tile for aligned scratch writes
    K = KH * K1p                    # single-contraction dim

    # ---------------- wrapper glue (layout only, fused under jit) ----------------
    xb = x_nchw.astype(compute_dtype)
    xp = jnp.pad(xb, ((0, 0), (0, 0), (1, 1), (1, 1)))                   # padding=1
    # Materialize the 3 kw-shifts so (h, w) flattens to a single lane-dense axis once,
    # removing every in-kernel reshape.  xw[n, kw*Cin+c, h, w] = xp[n, c, h, w+kw]
    xw = jnp.stack([xp[:, :, :, kw:kw + W] for kw in range(KW)], axis=1)  # (N, KW, Cin, H+2, W)
    xw = xw.reshape(N, K1, H + 2, W)
    xw = jnp.pad(xw, ((0, 0), (0, K1p - K1), (0, 0), (0, 0)))            # (N, K1p, H+2, W)
    # Overlapping row tiles with a 2-row halo, flattened so the kernel only lane-slices.
    xt = jnp.stack([xw[:, :, t * TH:t * TH + TH + 2, :] for t in range(T)],
                   axis=1)                                               # (N, T, K1p, TH+2, W)
    xt = xt.reshape(N, T, K1p, (TH + 2) * W)

    # Weights: (Cout, Cin, KH, KW) -> [co, kh, kw, c] -> pad kw*Cin to K1p -> (Cout, KH*K1p)
    w = jnp.transpose(weight_oihw, (0, 2, 3, 1)).reshape(Cout, KH, K1)
    w = jnp.pad(w, ((0, 0), (0, 0), (0, K1p - K1)))
    w = w.reshape(Cout, K).astype(compute_dtype)
    b2d = bias.reshape(Cout, 1).astype(jnp.float32)

    # ---------------- Pallas kernel ----------------
    def kernel(x_ref, w_ref, b_ref, o_ref, p_ref):
        # x_ref: (K1p, (TH+2)*W)  kw-shifted halo tile (bf16)
        # w_ref: (Cout, K)        repacked weights (bf16)
        # b_ref: (Cout, 1)        bias (f32)
        # o_ref: (Cout, TH*W)     lane-dense output tile (f32)
        # p_ref: (K, TH*W)        VMEM scratch: im2col patch matrix
        for kh in range(KH):  # 3 aligned sub-slab copies -> one K=KH*K1p contraction
            p_ref[kh * K1p:(kh + 1) * K1p, :] = x_ref[:, kh * W:kh * W + M]
        acc = jnp.dot(w_ref[...], p_ref[...],
                      preferred_element_type=jnp.float32)   # (Cout, M), single MXU matmul
        o_ref[...] = (acc + b_ref[...]).astype(o_ref.dtype)

    out_flat = pl.pallas_call(
        kernel,
        out_shape=jax.ShapeDtypeStruct((N, Cout, H * W), x_nchw.dtype),
        grid=(N, T),
        in_specs=[
            pl.BlockSpec((None, None, K1p, (TH + 2) * W), lambda n, t: (n, t, 0, 0)),
            pl.BlockSpec((Cout, K), lambda n, t: (0, 0)),
            pl.BlockSpec((Cout, 1), lambda n, t: (0, 0)),
        ],
        # (Cout, TH*W) blocks of a flat (N, Cout, H*W) output: 128-lane unmasked stores,
        # reshapes straight back to NCHW with no transpose.
        out_specs=pl.BlockSpec((None, Cout, M), lambda n, t: (n, 0, t)),
        scratch_shapes=[pltpu.VMEM((K, M), compute_dtype)],
        compiler_params=pltpu.CompilerParams(
            dimension_semantics=("parallel", "parallel"),
        ),
    )(xt, w, b2d)

    return out_flat.reshape(N, Cout, H, W)


if __name__ == "__main__":
    # Module config: spatial_dims=2, in_channels=4, out_channels=8,
    # kernel_size=3, stride=1, padding=1, bias=True.
    N, Cin, Cout, H, W = 2, 4, 8, 16, 16

    key = jax.random.PRNGKey(0)
    kx, kw_, kb = jax.random.split(key, 3)
    x = jax.random.normal(kx, (N, Cin, H, W), dtype=jnp.float32)
    # Deterministic PyTorch-like init (uniform in +/- 1/sqrt(fan_in)); synthetic, not a checkpoint.
    fan_in = Cin * KH * KW
    bound = 1.0 / (fan_in ** 0.5)
    weight = jax.random.uniform(kw_, (Cout, Cin, KH, KW), jnp.float32, -bound, bound)
    bias = jax.random.uniform(kb, (Cout,), jnp.float32, -bound, bound)

    conv = jax.jit(conv2d_3x3_pallas)
    out = jax.block_until_ready(conv(x, weight, bias))

    # Reference check against XLA conv (same semantics as nn.Conv2d with padding=1).
    ref = lax.conv_general_dilated(
        x, weight, window_strides=(1, 1), padding=((1, 1), (1, 1)),
        dimension_numbers=("NCHW", "OIHW", "NCHW"),
    ) + bias.reshape(1, Cout, 1, 1)

    assert out.shape == (N, Cout, H, W)
    # bf16 MXU operands with f32 accumulation -> loose-but-meaningful tolerance vs f32 reference.
    err = float(jnp.max(jnp.abs(out - ref)))
    assert jnp.allclose(out, ref, atol=3e-2, rtol=3e-2), f"mismatch vs reference conv, max|err|={err}"

    print("KERNEL_OK")
</pallas_src>

<mosaic_0001>
module attributes {stable_mosaic.version = 11 : i64} {
  func.func @kernel(%arg0: i32, %arg1: i32, %arg2: memref<1x1x16x160xbf16, #tpu.memory_space<vmem>>, %arg3: memref<8x48xbf16, #tpu.memory_space<vmem>>, %arg4: memref<8x1xf32, #tpu.memory_space<vmem>>, %arg5: memref<1x8x128xf32, #tpu.memory_space<vmem>>, %arg6: memref<48x128xbf16, #tpu.memory_space<vmem>>) attributes {dimension_semantics = [#tpu.dimension_semantics<parallel>, #tpu.dimension_semantics<parallel>], iteration_bounds = array<i64: 2, 2>, scalar_prefetch = 0 : i64, scratch_operands = 1 : i64, tpu.core_type = #tpu.core_type<tc>, window_params = [{transform_indices = @transform_0, window_bounds = array<i64: 1, 1, 16, 160>}, {pipeline_mode = #tpu.pipeline_mode<synchronous>, transform_indices = @transform_1, window_bounds = array<i64: 8, 48>}, {pipeline_mode = #tpu.pipeline_mode<synchronous>, transform_indices = @transform_2, window_bounds = array<i64: 8, 1>}, {transform_indices = @transform_3, window_bounds = array<i64: 1, 8, 128>}]} {
    %c0 = arith.constant 0 : index
    %c0_0 = arith.constant 0 : index
    %c0_1 = arith.constant 0 : index
    %c0_2 = arith.constant 0 : index
    %0 = vector.load %arg2[%c0, %c0_0, %c0_1, %c0_2] : memref<1x1x16x160xbf16, #tpu.memory_space<vmem>>, vector<1x1x16x128xbf16>
    %1 = vector.shape_cast %0 : vector<1x1x16x128xbf16> to vector<16x128xbf16>
    %c0_3 = arith.constant 0 : index
    %c0_4 = arith.constant 0 : index
    %2 = vector.load %arg6[%c0_3, %c0_4] : memref<48x128xbf16, #tpu.memory_space<vmem>>, vector<16x128xbf16>
    tpu.vector_store %arg6[%c0_3, %c0_4], %1 {strides = array<i32>} : memref<48x128xbf16, #tpu.memory_space<vmem>>, vector<16x128xbf16>,
    %c0_5 = arith.constant 0 : index
    %c0_6 = arith.constant 0 : index
    %c0_7 = arith.constant 0 : index
    %c16 = arith.constant 16 : index
    %3 = vector.load %arg2[%c0_5, %c0_6, %c0_7, %c16] : memref<1x1x16x160xbf16, #tpu.memory_space<vmem>>, vector<1x1x16x128xbf16>
    %4 = vector.shape_cast %3 : vector<1x1x16x128xbf16> to vector<16x128xbf16>
    %c16_8 = arith.constant 16 : index
    %c0_9 = arith.constant 0 : index
    %5 = vector.load %arg6[%c16_8, %c0_9] : memref<48x128xbf16, #tpu.memory_space<vmem>>, vector<16x128xbf16>
    tpu.vector_store %arg6[%c16_8, %c0_9], %4 {strides = array<i32>} : memref<48x128xbf16, #tpu.memory_space<vmem>>, vector<16x128xbf16>,
    %c0_10 = arith.constant 0 : index
    %c0_11 = arith.constant 0 : index
    %c0_12 = arith.constant 0 : index
    %c32 = arith.constant 32 : index
    %6 = vector.load %arg2[%c0_10, %c0_11, %c0_12, %c32] : memref<1x1x16x160xbf16, #tpu.memory_space<vmem>>, vector<1x1x16x128xbf16>
    %7 = vector.shape_cast %6 : vector<1x1x16x128xbf16> to vector<16x128xbf16>
    %c32_13 = arith.constant 32 : index
    %c0_14 = arith.constant 0 : index
    %8 = vector.load %arg6[%c32_13, %c0_14] : memref<48x128xbf16, #tpu.memory_space<vmem>>, vector<16x128xbf16>
    tpu.vector_store %arg6[%c32_13, %c0_14], %7 {strides = array<i32>} : memref<48x128xbf16, #tpu.memory_space<vmem>>, vector<16x128xbf16>,
    %c0_15 = arith.constant 0 : index
    %c0_16 = arith.constant 0 : index
    %9 = vector.load %arg3[%c0_15, %c0_16] : memref<8x48xbf16, #tpu.memory_space<vmem>>, vector<8x48xbf16>
    %c0_17 = arith.constant 0 : index
    %c0_18 = arith.constant 0 : index
    %10 = vector.load %arg6[%c0_17, %c0_18] : memref<48x128xbf16, #tpu.memory_space<vmem>>, vector<48x128xbf16>
    %cst = arith.constant dense<0.000000e+00> : vector<8x128xf32>
    %11 = tpu.matmul %9, %10, %cst {dimension_numbers = #tpu.dot_dimension_numbers<[1], [0], [0], [1], [0, 0, 1, 1], [], []>} : vector<8x48xbf16>, vector<48x128xbf16>, vector<8x128xf32> -> vector<8x128xf32>
    %c0_19 = arith.constant 0 : index
    %c0_20 = arith.constant 0 : index
    %12 = vector.load %arg4[%c0_19, %c0_20] : memref<8x1xf32, #tpu.memory_space<vmem>>, vector<8x1xf32>
    %13 = vector.broadcast %12 : vector<8x1xf32> to vector<8x128xf32>
    %14 = arith.addf %11, %13 : vector<8x128xf32>
    %c0_21 = arith.constant 0 : index
    %c0_22 = arith.constant 0 : index
    %c0_23 = arith.constant 0 : index
    %15 = vector.load %arg5[%c0_21, %c0_22, %c0_23] : memref<1x8x128xf32, #tpu.memory_space<vmem>>, vector<1x8x128xf32>
    %16 = vector.shape_cast %15 : vector<1x8x128xf32> to vector<8x128xf32>
    %17 = vector.shape_cast %14 : vector<8x128xf32> to vector<1x8x128xf32>
    tpu.vector_store %arg5[%c0_21, %c0_22, %c0_23], %17 {strides = array<i32>} : memref<1x8x128xf32, #tpu.memory_space<vmem>>, vector<1x8x128xf32>,
    return
  }
  func.func @transform_0(%arg0: i32, %arg1: i32) -> (i32, i32, i32, i32) {
    %c0_i32 = arith.constant 0 : i32
    %c0_i32_0 = arith.constant 0 : i32
    %c0_i32_1 = arith.constant 0 : i32
    return %arg0, %arg1, %c0_i32, %c0_i32_0 : i32, i32, i32, i32
  }
  func.func @transform_1(%arg0: i32, %arg1: i32) -> (i32, i32) {
    %c0_i32 = arith.constant 0 : i32
    %c0_i32_0 = arith.constant 0 : i32
    %c0_i32_1 = arith.constant 0 : i32
    return %c0_i32, %c0_i32_0 : i32, i32
  }
  func.func @transform_2(%arg0: i32, %arg1: i32) -> (i32, i32) {
    %c0_i32 = arith.constant 0 : i32
    %c0_i32_0 = arith.constant 0 : i32
    %c0_i32_1 = arith.constant 0 : i32
    return %c0_i32, %c0_i32_0 : i32, i32
  }
  func.func @transform_3(%arg0: i32, %arg1: i32) -> (i32, i32, i32) {
    %c0_i32 = arith.constant 0 : i32
    %c0_i32_0 = arith.constant 0 : i32
    return %arg0, %c0_i32, %arg1 : i32, i32, i32
  }
}

</mosaic_0001>

<bundles_post_ra>
// kernel: conv2d_3x3_pallas.1
= control target key start
LH: loop header
LB: loop body
LE: loop exit
PB: predicated region body
PF: predicated region fallthrough
CT: control target
= control target key end

     0   :  { %s553_s12 = smov 0   ;;  %s555_s13 = smov 0   ;;  %s613_s0 = inlined_call_operand.vmem [shape: bf16[2,2,16,160], index: 0, kind: input, shape index: {}]   ;;  %s614_s1 = inlined_call_operand.vmem [shape: bf16[8,48], index: 1, kind: input, shape index: {}]   ;;  %s615_s2 = inlined_call_operand.vmem [shape: f32[8,1], index: 2, kind: input, shape index: {}]   ;;  %s616_s3 = inlined_call_operand.vmem [shape: f32[2,8,256], index: 3, kind: output, shape index: {}]  }
   0x1   :  { %s557_s14 = smov 0   ;;  %s559_s15 = smov 0  }
   0x2   :  { %s561_s16 = smov 0  }
   0x3 LB: > { %s22_s17 = sadd.s32 1, %s518_s14  ;;  %s25_s18 = sadd.s32 1, %s522_s15  ;;  %s526_s16 = sphi %s561_s16, %s13_s16   ;;  %s522_s15 = sphi %s559_s15, %s620_s15   ;;  %s518_s14 = sphi %s557_s14, %s619_s14   ;;  %s514_s13 = sphi %s555_s13, %s618_s13   ;;  %s510_s12 = sphi %s553_s12, %s617_s12  }
   0x4   : > { %p23_p0 = scmp.ge.s32.totalorder %s22_s17, 2  ;;  %p413_p1 = scmp.ge.s32.totalorder %s526_s16, 1 }
   0x5   : > { %p157_p2 = scmp.lt.s32.totalorder %s526_s16, 5 }
   0x6   : > { %s622_s17 = smov (%p23_p0, %s22_s17), 0  ;;  %s624_s18 = smov (!%p23_p0, %s25_s18), %s522_s15 }
   0x7   : > { %p158_p3 = pnand %p413_p1, %p157_p2  ;;  %p27_p4 = scmp.ge.s32.totalorder %s624_s18, 2 }
   0x8   : > { %p188_p5 = scmp.lt.s32.totalorder (!%p158_p3), %s514_s13, 1  ;;  %p190_p6 = scmp.lt.s32.totalorder (!%p158_p3), %s510_s12, 1 }
   0x9   : > { %s626_s18 = smov (%p27_p4, %s624_s18), 0  ;;  %161 = sbr.rel (%p158_p3) target bundleno = 360 (0x168), region = 32 }
   0xa   : > { %s529_s26 = smov (!%p158_p3), 96   ;;  %s530_s27 = smov (!%p158_p3), 112  }
   0xe   : > { %s628_s13 = smov (!%p188_p5, %s514_s13), 1  ;;  %s630_s12 = smov (!%p190_p6, %s510_s12), 1  ;;  %v528_v0 = vmov 0.0   ;;  %vm531_vm0 = vmmov 0   ;;  %v251_v5 = vld [vmem:[%s615_s2] sm:$0xff]  ;;  %v532_v6 = vmov 0  }
   0xf   : > { %s415_s19 = sshll.u32 %s628_s13, 3  ;;  %s414_s20 = sshll.u32 %s630_s12, 2  ;;  %429 = vmatprep.subr.bf16.mxu0 %v528_v0  ;;  %435 = vmatprep.mubr.msk.bf16.mxu0 %vm531_vm0, %v528_v0  ;;  %vm237_vm1 = vcmask 785408   ;;  %vm220_vm2 = vcmask 916480   ;;  %v244_v22 = vld [vmem:[%s614_s1] sm:$0xf] }
  0x10   : > { %s194_s21 = sadd.s32 %s415_s19, %s414_s20  ;;  %s417_s30 = sshll.u32 %s628_s13, 1  ;;  %484 = vset.pattern.permute.xlu0 %v532_v6  ;;  %vm275_vm3 = vcmask 392192  }
  0x11   : > { %s416_s22 = sshll.u32 %s194_s21, 2  ;;  %s589_s4 = sadd.s32 %s417_s30, %s630_s12 }
  0x12   : > { %s196_s25 = scalar_lea.vmem %s613_s0, %s416_s22  ;;  %s418_s7 = sshll.u32 %s589_s4, 3 }
  0x13   : > { %v227_v1 = vld [vmem:[%s196_s25] sm:$0xff]  ;;  %v207_v3 = vld [vmem:[%s196_s25 + $0x8] sm:$0xf]  ;;  %s204_s10 = scalar_lea.vmem %s616_s3, %s418_s7 }
  0x14   : > { %v206_v2 = vld [vmem:[%s196_s25] sm:$0xf]  ;;  %231 = vrot.lane.b32.xlu0 %v227_v1, %s529_s26  ;;  %209 = vst [vmem:[#allocation2 + $0x4] sm:$0xf] %v207_v3  ;;  %214 = vrot.lane.b32.xlu1 %v227_v1, %s530_s27  ;;  %v228_v4 = vld [vmem:[%s196_s25 + $0x8] sm:$0xff] }
  0x15   : > { %208 = vst [vmem:[#allocation2] sm:$0xf] %v206_v2 }
  0x18   : > { %233 = vrot.lane.b32.xlu0 %v228_v4, %s529_s26  ;;  %216 = vrot.lane.b32.xlu1 %v228_v4, %s530_s27 }
  0x1c   : > { %254 = vperm.xlu0 %484, %v251_v5   ;;  %v487_v21 = vld [vmem:[#allocation2] sm:$0xff]  }
  0x86   : > { %v232_v7 = vpop.permute.xlu0 %231  ;;  %v215_v8 = vpop.permute.xlu1 %214 }
  0x87   : > { %v235_v9 = vrot.slane %v232_v7, 4  ;;  %v218_v10 = vrot.slane %v215_v8, 4 }
  0x89   : > { %v238_v11 = vsel %vm237_vm1, %v232_v7, %v235_v9  ;;  %v221_v12 = vsel %vm220_vm2, %v215_v8, %v218_v10 }
  0x8a   : > { %242 = vst [vmem:[#allocation2 + $0x10] sm:$0xf] %v238_v11  ;;  %225 = vst [vmem:[#allocation2 + $0x8] sm:$0xf] %v221_v12  ;;  %v234_v13 = vpop.permute.xlu0 %233  ;;  %v217_v14 = vpop.permute.xlu1 %216 }
  0x8b   : > { %v236_v15 = vrot.slane %v234_v13, 4  ;;  %v219_v16 = vrot.slane %v217_v14, 4 }
  0x8d   : > { %v239_v17 = vsel %vm237_vm1, %v234_v13, %v236_v15  ;;  %v222_v18 = vsel %vm220_vm2, %v217_v14, %v219_v16 }
  0x8e   : > { %243 = vst [vmem:[#allocation2 + $0x14] sm:$0xf] %v239_v17  ;;  %226 = vst [vmem:[#allocation2 + $0xc] sm:$0xf] %v222_v18 }
  0x95   : > { %v485_v19 = vld [vmem:[#allocation2 + $0x10] sm:$0xff]   ;;  %v486_v20 = vld [vmem:[#allocation2 + $0x8] sm:$0xff]  }
  0x96   : > { %430 = vmatpush3.bf16.msra.mxu0 %v485_v19 }
  0x97   : > { %431 = vmatprep.subr.bf16.mxu0 %v528_v0  ;;  %v255_v23 = vpop.permute.xlu0 %254 }
  0x9a   : > { %432 = vmatpush3.bf16.msra.mxu0 %v486_v20 }
  0x9b   : > { %433 = vmatprep.subr.bf16.mxu0 %v528_v0 }
  0x9e   : > { %434 = vmatpush3.bf16.msra.mxu0 %v487_v21 }
  0xa1   : > { %436 = vmatmul.mubr.msk.bf16.vlgmr.msra.gmra.mxu0 %vm275_vm3, %v244_v22 }
 0x161   : > { %v313_v24 = vpop.f32.mrf.mxu0 }
 0x162   : > { %v314_v25 = vadd.f32 %v313_v24, %v255_v23 }
 0x163   : > { %v437_v26 = vpop.f32.mrf.mxu0 }
 0x164   : > { %319 = vst [vmem:[%s204_s10] sm:$0xff] %v314_v25 }
 0x165   : > { %v316_v27 = vpop.f32.mrf.mxu0 }
 0x167   : > { %v438_v28 = vpop.f32.mrf.mxu0 }
 0x168 PF: > { %s13_s16 = sadd.s32 1, %s526_s16   ;;  %s617_s12 = smov %s518_s14 }
 0x169   : > { %p10_p7 = scmp.ge.s32.totalorder %s13_s16, 6   ;;  %s618_s13 = smov %s522_s15 }
 0x16a   : > { %s619_s14 = smov %s622_s17  ;;  %s620_s15 = smov %s626_s18 }
 0x16b   :  { %12 = sbr.rel (!%p10_p7) target bundleno = 3 (0x3), region = 62 }

</bundles_post_ra>
